<compile_context>
chip_gen: v5e
topology: v5e:2x2
jax: 0.10.0
libtpu: 0.0.40
codegen_flags: <defaults>
</compile_context>

<pallas_src>
import functools

import jax
import jax.numpy as jnp
from jax.experimental import pallas as pl
from jax.experimental.pallas import tpu as pltpu


# Rows of 128 boxes handled per grid step.  A (8, TILE_R, 128) f32 input block
# is 4096*TILE_R bytes: TILE_R=512 -> 2 MiB input block (65536 boxes/step),
# ~4.5 MiB double-buffered working set.
TILE_R = 512


def _iou_loss_kernel(x_ref, out_ref, *, smooth):
    """x_ref: (8, R_tile, 128) f32 coordinate planes; out_ref: (R_tile, 128).

    Plane layout (leading axis): 0..3 = pred (xmin, ymin, xmax, ymax),
    4..7 = target (xmin, ymin, xmax, ymax).  Each x_ref[c] is a dense
    (R_tile, 128) slab, so all VPU ops below are full-vreg.
    """
    p_xmin, p_ymin, p_xmax, p_ymax = x_ref[0], x_ref[1], x_ref[2], x_ref[3]
    xmin, ymin, xmax, ymax = x_ref[4], x_ref[5], x_ref[6], x_ref[7]

    u_xmin = jnp.maximum(p_xmin, xmin)
    u_ymin = jnp.maximum(p_ymin, ymin)
    u_xmax = jnp.minimum(p_xmax, xmax)
    u_ymax = jnp.minimum(p_ymax, ymax)

    # NOTE: intersection width/height are deliberately NOT clamped to >= 0 --
    # the reference PyTorch module does not clamp either.
    intersection = (u_xmax - u_xmin) * (u_ymax - u_ymin)
    total = (p_xmax - p_xmin) * (p_ymax - p_ymin) + (xmax - xmin) * (ymax - ymin)
    union = total - intersection

    denom = union + smooth
    # EUP approx reciprocal (separate VLIW slot from the VALU chain) + one
    # Newton refinement (~1e-7 relative of exact division).
    r = pl.reciprocal(denom, approx=True)
    r = r * (2.0 - denom * r)

    out_ref[...] = 1.0 - (intersection + smooth) * r


@functools.partial(jax.jit, static_argnames=("smooth", "tile_r"))
def _iou_loss_batched_impl(pred, tgt, smooth, tile_r):
    assert tile_r % 8 == 0
    n = pred.shape[0]

    # Dense coordinate-plane layout: (8 coords, R rows, 128 lanes).
    r_rows = max(8, pl.cdiv(n, 128))
    if r_rows > tile_r:
        r_rows = pl.cdiv(r_rows, tile_r) * tile_r    # rows -> multiple of tile_r
        step_r = tile_r
    else:
        r_rows = pl.cdiv(r_rows, 8) * 8              # rows -> multiple of 8
        step_r = r_rows                              # single grid step
    n_pad = r_rows * 128
    num_steps = r_rows // step_r

    # One (8, n_pad) slab built inside this jit so the pad/transpose stays
    # fused next to the pallas_call (no extra HBM round trip from the host
    # wrapper).  Zero padding is benign for smooth > 0: padded lanes give
    # iou = smooth/smooth = 1 -> loss 0, and they are sliced off below.
    slab = jnp.concatenate([pred.T, tgt.T], axis=0)          # (8, n)
    slab = jnp.pad(slab, ((0, 0), (0, n_pad - n)))           # (8, n_pad)
    slab = slab.reshape(8, r_rows, 128)

    kernel = functools.partial(_iou_loss_kernel, smooth=float(smooth))

    out = pl.pallas_call(
        kernel,
        out_shape=jax.ShapeDtypeStruct((r_rows, 128), jnp.float32),
        grid=(num_steps,),
        in_specs=[pl.BlockSpec((8, step_r, 128), lambda i: (0, i, 0))],
        out_specs=pl.BlockSpec((step_r, 128), lambda i: (i, 0)),
        compiler_params=pltpu.CompilerParams(
            # Only worth sharding across v7x's two TensorCores when the grid
            # actually has multiple sizable steps.
            dimension_semantics=(("parallel",) if num_steps > 1 else ("arbitrary",)),
        ),
    )(slab)

    return out.reshape(n_pad)[:n]


def iou_loss_batched(pred, tgt, smooth=1.0, *, tile_r=TILE_R):
    """Pallas-backed IoU loss over N box pairs.

    pred, tgt: arrays reshapeable to (N, 4) in [xmin, ymin, xmax, ymax] order.
    Returns: (N,) float32 losses, loss[i] = 1 - IoU(pred[i], tgt[i]).
    """
    pred = jnp.asarray(pred, jnp.float32).reshape(-1, 4)
    tgt = jnp.asarray(tgt, jnp.float32).reshape(-1, 4)
    assert pred.shape == tgt.shape, "pred/tgt must hold the same number of boxes"
    return _iou_loss_batched_impl(pred, tgt, smooth=float(smooth), tile_r=int(tile_r))


# ----------------------------------------------------------------------------
# Single-box forward (exact PyTorch module semantics) -- deliberately plain JAX
# so it fuses with surrounding ops (a Pallas call on 4 scalars is pure launch
# overhead).
# ----------------------------------------------------------------------------

def iou_loss(inputs, targets, smooth=1.0):
    """Equivalent of IoULoss.forward on one box pair. Returns a 0-d array."""
    inputs = jnp.ravel(inputs).astype(jnp.float32)
    targets = jnp.ravel(targets).astype(jnp.float32)
    p_xmin, p_ymin, p_xmax, p_ymax = inputs[0], inputs[1], inputs[2], inputs[3]
    xmin, ymin, xmax, ymax = targets[0], targets[1], targets[2], targets[3]
    u_xmin = jnp.maximum(p_xmin, xmin)
    u_ymin = jnp.maximum(p_ymin, ymin)
    u_xmax = jnp.minimum(p_xmax, xmax)
    u_ymax = jnp.minimum(p_ymax, ymax)
    intersection = (u_xmax - u_xmin) * (u_ymax - u_ymin)
    total = (p_xmax - p_xmin) * (p_ymax - p_ymin) + (xmax - xmin) * (ymax - ymin)
    union = total - intersection
    iou = (intersection + smooth) / (union + smooth)
    return 1.0 - iou


def iou_loss_ref_batched(pred, tgt, smooth=1.0):
    """Vectorized plain-JAX reference (exact division) for the batched kernel."""
    pred = jnp.asarray(pred, jnp.float32).reshape(-1, 4)
    tgt = jnp.asarray(tgt, jnp.float32).reshape(-1, 4)
    p_xmin, p_ymin, p_xmax, p_ymax = pred[:, 0], pred[:, 1], pred[:, 2], pred[:, 3]
    xmin, ymin, xmax, ymax = tgt[:, 0], tgt[:, 1], tgt[:, 2], tgt[:, 3]
    u_xmin = jnp.maximum(p_xmin, xmin)
    u_ymin = jnp.maximum(p_ymin, ymin)
    u_xmax = jnp.minimum(p_xmax, xmax)
    u_ymax = jnp.minimum(p_ymax, ymax)
    intersection = (u_xmax - u_xmin) * (u_ymax - u_ymin)
    total = (p_xmax - p_xmin) * (p_ymax - p_ymin) + (xmax - xmin) * (ymax - ymin)
    union = total - intersection
    iou = (intersection + smooth) / (union + smooth)
    return 1.0 - iou


def _make_boxes(key, n):
    """Deterministic well-formed boxes [xmin, ymin, xmax, ymax] (max >= min)."""
    raw = jax.random.uniform(key, (n, 4), dtype=jnp.float32, minval=0.0, maxval=8.0)
    lo = jnp.minimum(raw[:, :2], raw[:, 2:])
    hi = jnp.maximum(raw[:, :2], raw[:, 2:]) + 1.0
    return jnp.concatenate([lo, hi], axis=1)


if __name__ == "__main__":
    key = jax.random.PRNGKey(0)
    k1, k2, k3, k4, k5, k6 = jax.random.split(key, 6)

    # --- Single box pair (exact PyTorch module semantics, plain-JAX path) ---
    pred1 = _make_boxes(k1, 1)          # shape (1, 4), matches .view(-1) use
    tgt1 = _make_boxes(k2, 1)
    loss1 = jax.block_until_ready(iou_loss(pred1, tgt1, smooth=1.0))

    # Cross-check the Pallas kernel on the same single pair (N=1, padded).
    loss1_pallas = jax.block_until_ready(iou_loss_batched(pred1, tgt1, smooth=1.0))
    assert loss1_pallas.shape == (1,)
    assert jnp.allclose(loss1_pallas[0], loss1, atol=1e-4, rtol=1e-4), (
        loss1_pallas[0], loss1)

    # --- Batched case: RPN-proposal-style box pairs, single grid step ---
    n_boxes = 300                        # deliberately not a multiple of 128
    pred_b = _make_boxes(k3, n_boxes)
    tgt_b = _make_boxes(k4, n_boxes)
    losses = jax.block_until_ready(iou_loss_batched(pred_b, tgt_b, smooth=1.0))
    ref = iou_loss_ref_batched(pred_b, tgt_b, smooth=1.0)
    assert losses.shape == (n_boxes,)
    assert jnp.allclose(losses, ref, atol=1e-4, rtol=1e-4), (
        float(jnp.max(jnp.abs(losses - ref))))

    # --- Multi-step grid path (small tile_r keeps test shapes small) ---
    n_boxes2 = 3000
    pred_c = _make_boxes(k5, n_boxes2)
    tgt_c = _make_boxes(k6, n_boxes2)
    losses2 = jax.block_until_ready(
        iou_loss_batched(pred_c, tgt_c, smooth=1.0, tile_r=8))
    ref2 = iou_loss_ref_batched(pred_c, tgt_c, smooth=1.0)
    assert losses2.shape == (n_boxes2,)
    assert jnp.allclose(losses2, ref2, atol=1e-4, rtol=1e-4), (
        float(jnp.max(jnp.abs(losses2 - ref2))))

    print("KERNEL_OK")
</pallas_src>

<mosaic_0001>
module attributes {stable_mosaic.version = 11 : i64} {
  func.func @_iou_loss_kernel(%arg0: i32, %arg1: memref<8x8x128xf32, #tpu.memory_space<vmem>>, %arg2: memref<8x128xf32, #tpu.memory_space<vmem>>) attributes {dimension_semantics = [#tpu.dimension_semantics<arbitrary>], iteration_bounds = array<i64: 1>, scalar_prefetch = 0 : i64, scratch_operands = 0 : i64, tpu.core_type = #tpu.core_type<tc>, window_params = [{transform_indices = @transform_0, window_bounds = array<i64: 8, 8, 128>}, {transform_indices = @transform_1, window_bounds = array<i64: 8, 128>}]} {
    %c0 = arith.constant 0 : index
    %c0_0 = arith.constant 0 : index
    %c0_1 = arith.constant 0 : index
    %0 = vector.load %arg1[%c0, %c0_0, %c0_1] : memref<8x8x128xf32, #tpu.memory_space<vmem>>, vector<1x8x128xf32>
    %1 = vector.shape_cast %0 : vector<1x8x128xf32> to vector<8x128xf32>
    %c1 = arith.constant 1 : index
    %c0_2 = arith.constant 0 : index
    %c0_3 = arith.constant 0 : index
    %2 = vector.load %arg1[%c1, %c0_2, %c0_3] : memref<8x8x128xf32, #tpu.memory_space<vmem>>, vector<1x8x128xf32>
    %3 = vector.shape_cast %2 : vector<1x8x128xf32> to vector<8x128xf32>
    %c2 = arith.constant 2 : index
    %c0_4 = arith.constant 0 : index
    %c0_5 = arith.constant 0 : index
    %4 = vector.load %arg1[%c2, %c0_4, %c0_5] : memref<8x8x128xf32, #tpu.memory_space<vmem>>, vector<1x8x128xf32>
    %5 = vector.shape_cast %4 : vector<1x8x128xf32> to vector<8x128xf32>
    %c3 = arith.constant 3 : index
    %c0_6 = arith.constant 0 : index
    %c0_7 = arith.constant 0 : index
    %6 = vector.load %arg1[%c3, %c0_6, %c0_7] : memref<8x8x128xf32, #tpu.memory_space<vmem>>, vector<1x8x128xf32>
    %7 = vector.shape_cast %6 : vector<1x8x128xf32> to vector<8x128xf32>
    %c4 = arith.constant 4 : index
    %c0_8 = arith.constant 0 : index
    %c0_9 = arith.constant 0 : index
    %8 = vector.load %arg1[%c4, %c0_8, %c0_9] : memref<8x8x128xf32, #tpu.memory_space<vmem>>, vector<1x8x128xf32>
    %9 = vector.shape_cast %8 : vector<1x8x128xf32> to vector<8x128xf32>
    %c5 = arith.constant 5 : index
    %c0_10 = arith.constant 0 : index
    %c0_11 = arith.constant 0 : index
    %10 = vector.load %arg1[%c5, %c0_10, %c0_11] : memref<8x8x128xf32, #tpu.memory_space<vmem>>, vector<1x8x128xf32>
    %11 = vector.shape_cast %10 : vector<1x8x128xf32> to vector<8x128xf32>
    %c6 = arith.constant 6 : index
    %c0_12 = arith.constant 0 : index
    %c0_13 = arith.constant 0 : index
    %12 = vector.load %arg1[%c6, %c0_12, %c0_13] : memref<8x8x128xf32, #tpu.memory_space<vmem>>, vector<1x8x128xf32>
    %13 = vector.shape_cast %12 : vector<1x8x128xf32> to vector<8x128xf32>
    %c7 = arith.constant 7 : index
    %c0_14 = arith.constant 0 : index
    %c0_15 = arith.constant 0 : index
    %14 = vector.load %arg1[%c7, %c0_14, %c0_15] : memref<8x8x128xf32, #tpu.memory_space<vmem>>, vector<1x8x128xf32>
    %15 = vector.shape_cast %14 : vector<1x8x128xf32> to vector<8x128xf32>
    %16 = arith.maximumf %1, %9 : vector<8x128xf32>
    %17 = arith.maximumf %3, %11 : vector<8x128xf32>
    %18 = arith.minimumf %5, %13 : vector<8x128xf32>
    %19 = arith.minimumf %7, %15 : vector<8x128xf32>
    %20 = arith.subf %18, %16 : vector<8x128xf32>
    %21 = arith.subf %19, %17 : vector<8x128xf32>
    %22 = arith.mulf %20, %21 : vector<8x128xf32>
    %23 = arith.subf %5, %1 : vector<8x128xf32>
    %24 = arith.subf %7, %3 : vector<8x128xf32>
    %25 = arith.mulf %23, %24 : vector<8x128xf32>
    %26 = arith.subf %13, %9 : vector<8x128xf32>
    %27 = arith.subf %15, %11 : vector<8x128xf32>
    %28 = arith.mulf %26, %27 : vector<8x128xf32>
    %29 = arith.addf %25, %28 : vector<8x128xf32>
    %30 = arith.subf %29, %22 : vector<8x128xf32>
    %cst = arith.constant 1.000000e+00 : f32
    %31 = vector.broadcast %cst : f32 to vector<8x128xf32>
    %32 = arith.addf %30, %31 : vector<8x128xf32>
    %33 = tpu.reciprocal %32 {approx = true} : vector<8x128xf32> -> vector<8x128xf32>
    %34 = arith.mulf %32, %33 : vector<8x128xf32>
    %cst_16 = arith.constant 2.000000e+00 : f32
    %35 = vector.broadcast %cst_16 : f32 to vector<8x128xf32>
    %36 = arith.subf %35, %34 : vector<8x128xf32>
    %37 = arith.mulf %33, %36 : vector<8x128xf32>
    %cst_17 = arith.constant 1.000000e+00 : f32
    %38 = vector.broadcast %cst_17 : f32 to vector<8x128xf32>
    %39 = arith.addf %22, %38 : vector<8x128xf32>
    %40 = arith.mulf %39, %37 : vector<8x128xf32>
    %cst_18 = arith.constant 1.000000e+00 : f32
    %41 = vector.broadcast %cst_18 : f32 to vector<8x128xf32>
    %42 = arith.subf %41, %40 : vector<8x128xf32>
    %c0_19 = arith.constant 0 : index
    %c0_20 = arith.constant 0 : index
    %43 = vector.load %arg2[%c0_19, %c0_20] : memref<8x128xf32, #tpu.memory_space<vmem>>, vector<8x128xf32>
    tpu.vector_store %arg2[%c0_19, %c0_20], %42 {strides = array<i32>} : memref<8x128xf32, #tpu.memory_space<vmem>>, vector<8x128xf32>,
    return
  }
  func.func @transform_0(%arg0: i32) -> (i32, i32, i32) {
    %c0_i32 = arith.constant 0 : i32
    %c0_i32_0 = arith.constant 0 : i32
    %c0_i32_1 = arith.constant 0 : i32
    return %c0_i32, %arg0, %c0_i32_0 : i32, i32, i32
  }
  func.func @transform_1(%arg0: i32) -> (i32, i32) {
    %c0_i32 = arith.constant 0 : i32
    %c0_i32_0 = arith.constant 0 : i32
    return %arg0, %c0_i32 : i32, i32
  }
}

</mosaic_0001>

<bundles_post_ra>
// kernel: _iou_loss_batched_impl.1
= control target key start
LH: loop header
LB: loop body
LE: loop exit
PB: predicated region body
PF: predicated region fallthrough
CT: control target
= control target key end

     0   :  { %s97_s0 = inlined_call_operand.vmem [shape: f32[8,8,128], index: 0, kind: input, shape index: {}]   ;;  %s98_s1 = inlined_call_operand.vmem [shape: f32[8,128], index: 1, kind: output, shape index: {}]  }
   0x1   :  { %v8_v0 = vld [vmem:[%s97_s0] sm:$0xff]  ;;  %v51_v1 = vld [vmem:[%s97_s0 + $0x8] sm:$0xff]  ;;  %v52_v2 = vld [vmem:[%s97_s0 + $0x10] sm:$0xff] }
   0x2   :  { %v53_v3 = vld [vmem:[%s97_s0 + $0x18] sm:$0xff]  ;;  %v54_v4 = vld [vmem:[%s97_s0 + $0x20] sm:$0xff]  ;;  %v55_v5 = vld [vmem:[%s97_s0 + $0x28] sm:$0xff]  ;;  %v30_v6 = vsub.f32 %v52_v2, %v8_v0 }
   0x3   :  { %v56_v7 = vld [vmem:[%s97_s0 + $0x30] sm:$0xff]  ;;  %v57_v8 = vld [vmem:[%s97_s0 + $0x38] sm:$0xff]  ;;  %v23_v9 = vmax.f32 %v8_v0, %v54_v4  ;;  %v24_v10 = vmax.f32 %v51_v1, %v55_v5  ;;  %v31_v11 = vsub.f32 %v53_v3, %v51_v1 }
   0x4   :  { %v25_v12 = vmin.f32 %v52_v2, %v56_v7  ;;  %v26_v13 = vmin.f32 %v53_v3, %v57_v8  ;;  %v33_v14 = vsub.f32 %v56_v7, %v54_v4  ;;  %v34_v15 = vsub.f32 %v57_v8, %v55_v5 }
   0x5   :  { %v32_v16 = vmul.f32 %v31_v11, %v30_v6 }
   0x6   :  { %v27_v17 = vsub.f32 %v25_v12, %v23_v9  ;;  %v28_v18 = vsub.f32 %v26_v13, %v24_v10  ;;  %v35_v19 = vmul.f32 %v34_v15, %v33_v14 }
   0x8   :  { %v29_v20 = vmul.f32 %v28_v18, %v27_v17  ;;  %v36_v21 = vadd.f32 %v35_v19, %v32_v16 }
   0xa   :  { %v37_v22 = vsub.f32 %v36_v21, %v29_v20  ;;  %v43_v27 = vadd.f32 1.0, %v29_v20 }
   0xc   :  { %v38_v23 = vadd.f32 1.0, %v37_v22 }
   0xe   :  { %58 = vrcp.f32 %v38_v23 }
  0x14   :  { %v59_v24 = vpop.eup %58 }
  0x15   :  { %v40_v25 = vmul.f32 %v59_v24, %v38_v23 }
  0x17   :  { %v41_v26 = vsub.f32 2.0, %v40_v25 }
  0x19   :  { %v42_v28 = vmul.f32 %v59_v24, %v41_v26 }
  0x1b   :  { %v44_v29 = vmul.f32 %v43_v27, %v42_v28 }
  0x1d   :  { %v45_v30 = vsub.f32 1.0, %v44_v29 }
  0x1f   :  { %46 = vst [vmem:[%s98_s1] sm:$0xff] %v45_v30 }

</bundles_post_ra>
